<compile_context>
chip_gen: v7x
topology: tpu7x:2x2x1
jax: 0.10.0
libtpu: 0.0.40
codegen_flags: <defaults>
</compile_context>

<pallas_src>
import functools

import jax
import jax.numpy as jnp
from jax.experimental import pallas as pl
from jax.experimental.pallas import tpu as pltpu


def _se_kernel(x_ref, w1t_ref, w2t_ref, o_ref, acc_ref, *,
               inv_hw, hw, tile_hw, needs_mask):
    """One grid step = (batch tile i, spatial tile t).

    x_ref:   (BT, C, TILE_HW) native-dtype spatial tile of BT batch elements
    w1t_ref: (C, R)           fc1 weight, transposed, f32
    w2t_ref: (R, C)           fc2 weight, transposed, f32
    o_ref:   (BT, C)          per-batch channel attention weights
    acc_ref: (BT, C)          f32 partial-sum accumulator (VMEM scratch)
    """
    t = pl.program_id(1)

    @pl.when(t == 0)
    def _():
        acc_ref[...] = jnp.zeros_like(acc_ref)

    # Upcast per tile (x stays in native dtype in HBM -> ~2-3x less traffic
    # for bf16 inputs); accumulate in f32.
    xs = x_ref[...].astype(jnp.float32)                      # (BT, C, TILE_HW)
    if needs_mask:
        # Tail tile of a non-divisible H*W: zero the out-of-bounds lanes.
        pos = t * tile_hw + jax.lax.broadcasted_iota(jnp.int32, xs.shape, 2)
        xs = jnp.where(pos < hw, xs, 0.0)
    acc_ref[...] += jnp.sum(xs, axis=-1)                     # (BT, C)

    @pl.when(t == pl.num_programs(1) - 1)
    def _():
        gap = acc_ref[...] * inv_hw                          # (BT, C) mean
        hid = jnp.maximum(
            jnp.dot(gap, w1t_ref[...], preferred_element_type=jnp.float32),
            0.0)                                             # (BT, R) fc1+ReLU
        logits = jnp.dot(hid, w2t_ref[...],
                         preferred_element_type=jnp.float32)  # (BT, C) fc2
        o_ref[...] = (1.0 / (1.0 + jnp.exp(-logits))).astype(o_ref.dtype)


# ~4 MiB per x block: saturates HBM on all generations and, with double
# buffering + weights + scratch, stays well inside v7x's 64 MiB VMEM.
_DEFAULT_BLOCK_BUDGET = 4 << 20


def _pick_spatial_tile(hw, c, itemsize, budget):
    """Returns (tile_hw, n_spatial_tiles, needs_mask)."""
    if hw <= 128 or c * hw * itemsize <= budget:
        return hw, 1, False                          # single full-spatial tile
    # Largest lane-aligned (multiple-of-128) tile under the byte budget.
    max_tile = max(128, (budget // (c * itemsize)) // 128 * 128)
    max_tile = min(max_tile, (hw // 128) * 128)
    # Prefer a multiple-of-128 divisor of hw (no tail masking needed).
    best = None
    t = 128
    while t <= max_tile:
        if hw % t == 0:
            best = t
        t += 128
    if best is not None:
        return best, hw // best, False
    return max_tile, pl.cdiv(hw, max_tile), True     # tail masked in-kernel


def _pick_batch_tile(b, c, tile_hw, itemsize, budget):
    """Largest divisor of b whose (bt, c, tile_hw) block fits the budget."""
    block_bytes = c * tile_hw * itemsize
    max_bt = max(1, budget // block_bytes)
    bt = 1
    for d in range(1, min(b, max_bt) + 1):
        if b % d == 0:
            bt = d
    return bt


def se_forward(x_nchw, w_fc1, w_fc2, *, block_budget_bytes=_DEFAULT_BLOCK_BUDGET):
    """SE forward pass.

    x_nchw: (B, C, H, W)  any float dtype (kept native in HBM)
    w_fc1:  (R, C)        nn.Linear(C, R, bias=False).weight
    w_fc2:  (C, R)        nn.Linear(R, C, bias=False).weight
    returns (B, C, 1, 1)  channel attention weights (x dtype)
    """
    b, c, h, w = x_nchw.shape
    r = w_fc1.shape[0]
    hw = h * w
    itemsize = x_nchw.dtype.itemsize

    # (B, C, H*W): pure reshape, native dtype -- no extra HBM copy.
    x3 = x_nchw.reshape(b, c, hw)

    tile_hw, n_sp, needs_mask = _pick_spatial_tile(hw, c, itemsize,
                                                   block_budget_bytes)
    bt = _pick_batch_tile(b, c, tile_hw, itemsize, block_budget_bytes)

    w1t = jnp.transpose(w_fc1).astype(jnp.float32)           # (C, R)
    w2t = jnp.transpose(w_fc2).astype(jnp.float32)           # (R, C)

    kernel = functools.partial(_se_kernel, inv_hw=1.0 / float(hw), hw=hw,
                               tile_hw=tile_hw, needs_mask=needs_mask)

    out = pl.pallas_call(
        kernel,
        out_shape=jax.ShapeDtypeStruct((b, c), x_nchw.dtype),
        grid=(b // bt, n_sp),
        in_specs=[
            pl.BlockSpec((bt, c, tile_hw), lambda i, t: (i, 0, t)),
            pl.BlockSpec((c, r), lambda i, t: (0, 0)),
            pl.BlockSpec((r, c), lambda i, t: (0, 0)),
        ],
        out_specs=pl.BlockSpec((bt, c), lambda i, t: (i, 0)),
        scratch_shapes=[pltpu.VMEM((bt, c), jnp.float32)],
        compiler_params=pltpu.CompilerParams(
            dimension_semantics=("parallel", "arbitrary"),
            # 2 x-buffers at <=4 MiB each + weights + scratch; explicit so
            # v5e's 16 MiB default scoped limit never shrinks the pipeline.
            vmem_limit_bytes=32 * 1024 * 1024),
    )(x3, w1t, w2t)

    return out.reshape(b, c, 1, 1)


def _reference(x_f32, w_fc1, w_fc2):
    b, c = x_f32.shape[:2]
    y = jnp.mean(x_f32, axis=(2, 3))                 # AdaptiveAvgPool2d((1,1))
    y = jnp.maximum(y @ w_fc1.T, 0.0)                # Linear + ReLU
    y = jax.nn.sigmoid(y @ w_fc2.T)                  # Linear + Sigmoid
    return y.reshape(b, c, 1, 1)


if __name__ == "__main__":
    key = jax.random.PRNGKey(0)
    k_x, k_w1, k_w2, k_x2 = jax.random.split(key, 4)

    B, C, H, W, RATIO = 2, 32, 16, 16, 16
    x = jax.random.normal(k_x, (B, C, H, W), dtype=jnp.float32)
    # nn.Linear(C, RATIO, bias=False) / nn.Linear(RATIO, C, bias=False) weights.
    w_fc1 = jax.random.normal(k_w1, (RATIO, C), dtype=jnp.float32) * 0.1
    w_fc2 = jax.random.normal(k_w2, (C, RATIO), dtype=jnp.float32) * 0.1

    # 1) f32 input, single spatial tile, B_TILE = B.
    out = jax.block_until_ready(se_forward(x, w_fc1, w_fc2))
    ref = _reference(x, w_fc1, w_fc2)
    assert out.shape == (B, C, 1, 1)
    assert jnp.allclose(out, ref, atol=1e-5, rtol=1e-5), "f32 mismatch vs reference"

    # 2) bf16 input: x stays bf16 in HBM, upcast per tile inside the kernel.
    x_bf16 = x.astype(jnp.bfloat16)
    out_bf = jax.block_until_ready(se_forward(x_bf16, w_fc1, w_fc2))
    ref_bf = _reference(x_bf16.astype(jnp.float32), w_fc1, w_fc2)
    assert out_bf.dtype == jnp.bfloat16
    assert jnp.allclose(out_bf.astype(jnp.float32), ref_bf,
                        atol=2e-2, rtol=2e-2), "bf16 mismatch vs reference"

    # 3) Non-128-divisible H*W with a tiny budget to force spatial tiling and
    #    exercise the cdiv + tail-mask path (grid = (2, 4), masked last tile).
    x2 = jax.random.normal(k_x2, (B, C, 20, 20), dtype=jnp.float32)
    out2 = jax.block_until_ready(
        se_forward(x2, w_fc1, w_fc2, block_budget_bytes=16 * 1024))
    ref2 = _reference(x2, w_fc1, w_fc2)
    assert jnp.allclose(out2, ref2, atol=1e-5, rtol=1e-5), "masked-tile mismatch"

    print("KERNEL_OK")
</pallas_src>

<mosaic_0001>
module attributes {stable_mosaic.version = 11 : i64} {
  func.func @_se_kernel(%arg0: i32, %arg1: i32, %arg2: memref<2x32x256xf32, #tpu.memory_space<vmem>>, %arg3: memref<32x16xf32, #tpu.memory_space<vmem>>, %arg4: memref<16x32xf32, #tpu.memory_space<vmem>>, %arg5: memref<2x32xf32, #tpu.memory_space<vmem>>, %arg6: memref<2x32xf32, #tpu.memory_space<vmem>>) attributes {dimension_semantics = [#tpu.dimension_semantics<parallel>, #tpu.dimension_semantics<arbitrary>], iteration_bounds = array<i64: 1, 1>, scalar_prefetch = 0 : i64, scratch_operands = 1 : i64, tpu.core_type = #tpu.core_type<tc>, window_params = [{transform_indices = @transform_0, window_bounds = array<i64: 2, 32, 256>}, {pipeline_mode = #tpu.pipeline_mode<synchronous>, transform_indices = @transform_1, window_bounds = array<i64: 32, 16>}, {pipeline_mode = #tpu.pipeline_mode<synchronous>, transform_indices = @transform_2, window_bounds = array<i64: 16, 32>}, {transform_indices = @transform_3, window_bounds = array<i64: 2, 32>}]} {
    %c0_i32 = arith.constant 0 : i32
    %0 = arith.cmpi eq, %arg1, %c0_i32 : i32
    %1 = arith.extui %0 : i1 to i32
    %c0_i32_0 = arith.constant 0 : i32
    %2 = arith.cmpi ne, %1, %c0_i32_0 : i32
    scf.if %2 {
      %cst_9 = arith.constant 0.000000e+00 : f32
      %11 = vector.broadcast %cst_9 : f32 to vector<2x32xf32>
      %c0_10 = arith.constant 0 : index
      %c0_11 = arith.constant 0 : index
      %12 = vector.load %arg6[%c0_10, %c0_11] : memref<2x32xf32, #tpu.memory_space<vmem>>, vector<2x32xf32>
      tpu.vector_store %arg6[%c0_10, %c0_11], %11 {strides = array<i32>} : memref<2x32xf32, #tpu.memory_space<vmem>>, vector<2x32xf32>,
    } else {
    }
    %c0 = arith.constant 0 : index
    %c0_1 = arith.constant 0 : index
    %c0_2 = arith.constant 0 : index
    %3 = vector.load %arg2[%c0, %c0_1, %c0_2] : memref<2x32x256xf32, #tpu.memory_space<vmem>>, vector<2x32x256xf32>
    %c0_3 = arith.constant 0 : index
    %c0_4 = arith.constant 0 : index
    %4 = vector.load %arg6[%c0_3, %c0_4] : memref<2x32xf32, #tpu.memory_space<vmem>>, vector<2x32xf32>
    %cst = arith.constant dense<0.000000e+00> : vector<2x32xf32>
    %5 = vector.multi_reduction <add>, %3, %cst [2] : vector<2x32x256xf32> to vector<2x32xf32>
    %6 = arith.addf %4, %5 : vector<2x32xf32>
    %c0_5 = arith.constant 0 : index
    %c0_6 = arith.constant 0 : index
    %7 = vector.load %arg6[%c0_5, %c0_6] : memref<2x32xf32, #tpu.memory_space<vmem>>, vector<2x32xf32>
    tpu.vector_store %arg6[%c0_5, %c0_6], %6 {strides = array<i32>} : memref<2x32xf32, #tpu.memory_space<vmem>>, vector<2x32xf32>,
    %c0_i32_7 = arith.constant 0 : i32
    %8 = arith.cmpi eq, %arg1, %c0_i32_7 : i32
    %9 = arith.extui %8 : i1 to i32
    %c0_i32_8 = arith.constant 0 : i32
    %10 = arith.cmpi ne, %9, %c0_i32_8 : i32
    scf.if %10 {
      %c0_9 = arith.constant 0 : index
      %c0_10 = arith.constant 0 : index
      %11 = vector.load %arg6[%c0_9, %c0_10] : memref<2x32xf32, #tpu.memory_space<vmem>>, vector<2x32xf32>
      %cst_11 = arith.constant 3.906250e-03 : f32
      %12 = vector.broadcast %cst_11 : f32 to vector<2x32xf32>
      %13 = arith.mulf %11, %12 : vector<2x32xf32>
      %c0_12 = arith.constant 0 : index
      %c0_13 = arith.constant 0 : index
      %14 = vector.load %arg3[%c0_12, %c0_13] : memref<32x16xf32, #tpu.memory_space<vmem>>, vector<32x16xf32>
      %cst_14 = arith.constant dense<0.000000e+00> : vector<2x16xf32>
      %15 = tpu.matmul %13, %14, %cst_14 {dimension_numbers = #tpu.dot_dimension_numbers<[1], [0], [0], [1], [0, 0, 1, 1], [], []>} : vector<2x32xf32>, vector<32x16xf32>, vector<2x16xf32> -> vector<2x16xf32>
      %cst_15 = arith.constant 0.000000e+00 : f32
      %16 = vector.broadcast %cst_15 : f32 to vector<2x16xf32>
      %17 = arith.maximumf %15, %16 : vector<2x16xf32>
      %c0_16 = arith.constant 0 : index
      %c0_17 = arith.constant 0 : index
      %18 = vector.load %arg4[%c0_16, %c0_17] : memref<16x32xf32, #tpu.memory_space<vmem>>, vector<16x32xf32>
      %cst_18 = arith.constant dense<0.000000e+00> : vector<2x32xf32>
      %19 = tpu.matmul %17, %18, %cst_18 {dimension_numbers = #tpu.dot_dimension_numbers<[1], [0], [0], [1], [0, 0, 1, 1], [], []>} : vector<2x16xf32>, vector<16x32xf32>, vector<2x32xf32> -> vector<2x32xf32>
      %cst_19 = arith.constant 0.000000e+00 : f32
      %20 = vector.broadcast %cst_19 : f32 to vector<2x32xf32>
      %21 = arith.subf %20, %19 : vector<2x32xf32>
      %22 = math.exp %21 : vector<2x32xf32>
      %cst_20 = arith.constant 1.000000e+00 : f32
      %23 = vector.broadcast %cst_20 : f32 to vector<2x32xf32>
      %24 = arith.addf %23, %22 : vector<2x32xf32>
      %cst_21 = arith.constant 1.000000e+00 : f32
      %25 = vector.broadcast %cst_21 : f32 to vector<2x32xf32>
      %26 = arith.divf %25, %24 : vector<2x32xf32>
      %c0_22 = arith.constant 0 : index
      %c0_23 = arith.constant 0 : index
      %27 = vector.load %arg5[%c0_22, %c0_23] : memref<2x32xf32, #tpu.memory_space<vmem>>, vector<2x32xf32>
      tpu.vector_store %arg5[%c0_22, %c0_23], %26 {strides = array<i32>} : memref<2x32xf32, #tpu.memory_space<vmem>>, vector<2x32xf32>,
    } else {
    }
    return
  }
  func.func @transform_0(%arg0: i32, %arg1: i32) -> (i32, i32, i32) {
    %c0_i32 = arith.constant 0 : i32
    %c0_i32_0 = arith.constant 0 : i32
    return %arg0, %c0_i32, %arg1 : i32, i32, i32
  }
  func.func @transform_1(%arg0: i32, %arg1: i32) -> (i32, i32) {
    %c0_i32 = arith.constant 0 : i32
    %c0_i32_0 = arith.constant 0 : i32
    %c0_i32_1 = arith.constant 0 : i32
    return %c0_i32, %c0_i32_0 : i32, i32
  }
  func.func @transform_2(%arg0: i32, %arg1: i32) -> (i32, i32) {
    %c0_i32 = arith.constant 0 : i32
    %c0_i32_0 = arith.constant 0 : i32
    %c0_i32_1 = arith.constant 0 : i32
    return %c0_i32, %c0_i32_0 : i32, i32
  }
  func.func @transform_3(%arg0: i32, %arg1: i32) -> (i32, i32) {
    %c0_i32 = arith.constant 0 : i32
    %c0_i32_0 = arith.constant 0 : i32
    return %arg0, %c0_i32 : i32, i32
  }
}

</mosaic_0001>

<bundles_post_ra>
// kernel: tpu_custom_call.1
= control target key start
LH: loop header
LB: loop body
LE: loop exit
PB: predicated region body
PF: predicated region fallthrough
CT: control target
= control target key end

     0   :  { %8 = vsyncpa [#allocation4], 0  ;;  %s486_s0 = inlined_call_operand.hbm [shape: f32[2,32,256], index: 0, kind: input, shape index: {}]   ;;  %s487_s1 = inlined_call_operand.vmem [shape: f32[32,16], index: 1, kind: input, shape index: {}]   ;;  %s488_s2 = inlined_call_operand.vmem [shape: f32[16,32], index: 2, kind: input, shape index: {}]   ;;  %s489_s3 = inlined_call_operand.hbm [shape: f32[2,32], index: 3, kind: output, shape index: {}]  }
   0x1   :  { %9 = vsyncpa [#allocation5], 0  ;;  %s414_s12 = smov [#allocation3]   ;;  %s366_s16 = scalar_lea.hbm %s486_s0, 2048 }
   0x2   :  { %s15_s13 = sshll.u32 %s414_s12, 4  ;;  %p367_p0 = scmp.ne.s32.totalorder %s486_s0, %s366_s16  ;;  %s16_s13 = int_to_ptr.vmem [resolvable:$true] %s15_s13 }
   0x3   :  { %p370_p1 = scmp.lt.u32.totalorder %s366_s16, %s486_s0 }
   0x5   :  { %p372_p2 = pnand %p370_p1, %p367_p0 }
   0x7   :  { %375 = shalt.err (!%p372_p2)
}
   0x8   :  { %s376_s21 = scalar_lea.vmem %s16_s13, 2048  ;;  %p381_p4 = scmp.lt.s32.totalorder %s16_s13, %s16_s13 }
   0x9   :  { %p377_p3 = scmp.ne.s32.totalorder %s16_s13, %s376_s21  ;;  %p382_p5 = scmp.lt.s32.totalorder %s376_s21, %s376_s21 }
   0xb   :  { %p383_p6 = por %p382_p5, %p381_p4 }
   0xd   :  { %p384_p7 = pnand %p383_p6, %p377_p3 }
   0xf   :  { %387 = shalt.err (!%p384_p7)
}
  0x10   :  { %s415_s22 = smov 256   ;;  %s416_s23 = smov 16  }
  0x11   :  { %21 = dma.hbm_to_vmem [thread:$0]  %s486_s0, 2048, %s16_s13, [#allocation4], %s415_s22, %s415_s22, %s416_s23  }
  0x12   :  { %410 = dma.done.wait [#allocation4], 2048  }
  0x13   :  { %411 = vsyncadd [#allocation4], 4294965248  ;;  %v43_v0 = vld [vmem:[#allocation3 + $0x40] sm:$0xff]  ;;  %v44_v1 = vld [vmem:[#allocation3 + $0x48] sm:$0xff]  ;;  %vm33_vm0 = vcmask 254976   ;;  %v417_v24 = vmov 0.0   ;;  %v84_v32 = vlaneseq }
  0x14   :  { %v35_v2 = vld [vmem:[#allocation3] sm:$0xff]  ;;  %v64_v3 = vadd.f32 %v44_v1, %v43_v0  ;;  %v36_v4 = vld [vmem:[#allocation3 + $0x8] sm:$0xff]  ;;  %v45_v5 = vld [vmem:[#allocation3 + $0x50] sm:$0xff]  ;;  %34 = vst.msk [vmem:[#allocation2] sm:$0x3] %vm33_vm0, %v417_v24  ;;  %v418_v28 = vmov 0.0|0.0  }
  0x15   :  { %v46_v6 = vld [vmem:[#allocation3 + $0x58] sm:$0xff]  ;;  %v52_v7 = vadd.f32 %v36_v4, %v35_v2  ;;  %v37_v8 = vld [vmem:[#allocation3 + $0x10] sm:$0xff]  ;;  %v47_v12 = vld [vmem:[#allocation3 + $0x60] sm:$0xff]  ;;  %346 = vmatprep.subr.bf16.mxu0 %v418_v28  ;;  %352 = vmatprep.subr.bf16.mxu1 %v418_v28  ;;  %vm419_vm1 = vmmov 0   ;;  %v85_v33 = vand.u32 127, %v84_v32  ;;  %v87_v38 = vshrl.u32 %v84_v32, 7 }
  0x16   :  { %v38_v9 = vld [vmem:[#allocation3 + $0x18] sm:$0xff]  ;;  %65 = vadd.xlane.f32.xlu1 %v64_v3  ;;  %v67_v10 = vadd.f32 %v46_v6, %v45_v5  ;;  %v48_v13 = vld [vmem:[#allocation3 + $0x68] sm:$0xff]  ;;  %v39_v14 = vld [vmem:[#allocation3 + $0x20] sm:$0xff]  ;;  %336 = vmatprep.mubr.msk.f32.mxu0 %vm419_vm1, %v417_v24  ;;  %vm95_vm2 = vcmask 130112   ;;  %vm102_vm3 = vcmask 195712   ;;  %vm109_vm4 = vcmask 261312  }
  0x17   :  { %53 = vadd.xlane.f32.xlu0 %v52_v7  ;;  %v55_v11 = vadd.f32 %v38_v9, %v37_v8  ;;  %v40_v15 = vld [vmem:[#allocation3 + $0x28] sm:$0xff]  ;;  %v70_v16 = vadd.f32 %v48_v13, %v47_v12  ;;  %v49_v18 = vld [vmem:[#allocation3 + $0x70] sm:$0xff]  ;;  %v50_v19 = vld [vmem:[#allocation3 + $0x78] sm:$0xff]  ;;  %343 = vmatprep.mubr.msk.f32.mxu1 %vm419_vm1, %v417_v24  ;;  %v90_v36 = vadd.s32 4294967288, %v85_v33  ;;  %v97_v37 = vadd.s32 4294967280, %v85_v33  ;;  %s420_s9 = smov [#allocation6]  }
  0x18   :  { %v58_v17 = vadd.f32 %v40_v15, %v39_v14  ;;  %v41_v20 = vld [vmem:[#allocation3 + $0x30] sm:$0xff]  ;;  %v42_v21 = vld [vmem:[#allocation3 + $0x38] sm:$0xff]  ;;  %v73_v22 = vadd.f32 %v50_v19, %v49_v18  ;;  %v142_v26 = vld [vmem:[%s487_s1 + $0x8] sm:$0xff]  ;;  %v104_v42 = vadd.s32 4294967272, %v85_v33  ;;  %v88_v44 = vsub.s32 %v85_v33, %v87_v38  ;;  %s309_s10 = sshll.u32 %s420_s9, 4  ;;  %s310_s10 = int_to_ptr.vmem [resolvable:$true] %s309_s10 }
  0x19   :  { %v61_v23 = vadd.f32 %v42_v21, %v41_v20  ;;  %v141_v25 = vld [vmem:[%s487_s1] sm:$0xff]  ;;  %v143_v27 = vld [vmem:[%s487_s1 + $0x10] sm:$0xff]  ;;  %v144_v30 = vld [vmem:[%s487_s1 + $0x18] sm:$0xff]  ;;  %v93_v40 = vsub.s32 %v90_v36, %v87_v38  ;;  %v100_v43 = vsub.s32 %v97_v37, %v87_v38  ;;  %vm130_vm5 = vcmask 1041409   ;;  %p393_p9 = scmp.lt.s32.totalorder %s310_s10, %s310_s10 }
  0x1a   :  { %68 = vadd.xlane.f32.xlu1 %v67_v10  ;;  %v347_v29 = vpack.c.bf16 %v142_v26, %v141_v25  ;;  %v350_v31 = vpack.c.bf16 %v144_v30, %v143_v27  ;;  %v107_v48 = vsub.s32 %v104_v42, %v87_v38  ;;  %vm145_vm6 = vcmask 261120   ;;  %v220_v5 = vld [vmem:[%s488_s2] sm:$0xff]  ;;  %v221_v6 = vld [vmem:[%s488_s2 + $0x8] sm:$0xff]  ;;  %s388_s2 = scalar_lea.vmem %s310_s10, 32 }
  0x1b   :  { %56 = vadd.xlane.f32.xlu0 %v55_v11  ;;  %v51_v63 = vld [vmem:[#allocation2] sm:$0x3]  ;;  %v353_v7 = vpack.c.bf16 %v221_v6, %v220_v5  ;;  %vm222_vm7 = vcmask 130048   ;;  %p389_p8 = scmp.ne.s32.totalorder %s310_s10, %s388_s2  ;;  %p394_p10 = scmp.lt.s32.totalorder %s388_s2, %s388_s2 }
  0x1c   :  { %348 = vmatpush3.bf16.msra.mxu0 %v347_v29 }
  0x1d   :  { %349 = vmatprep.subr.bf16.mxu0 %v418_v28  ;;  %354 = vmatpush3.bf16.msra.mxu1 %v353_v7  ;;  %p395_p11 = por %p394_p10, %p393_p9 }
  0x1e   :  { %71 = vadd.xlane.f32.xlu1 %v70_v16 }
  0x1f   :  { %59 = vadd.xlane.f32.xlu0 %v58_v17  ;;  %p396_p12 = pnand %p395_p11, %p389_p8 }
  0x20   :  { %351 = vmatpush3.bf16.msra.mxu0 %v350_v31 }
  0x22   :  { %74 = vadd.xlane.f32.xlu1 %v73_v22 }
  0x23   :  { %62 = vadd.xlane.f32.xlu0 %v61_v23 }
  0xa3   :  { %v66_v34 = vpop.xlane.xlu1 %65 }
  0xa4   :  { %v54_v35 = vpop.xlane.xlu0 %53  ;;  %v114_v51 = vrot.slane %v66_v34, %v88_v44 }
  0xa5   :  { %v89_v53 = vrot.slane %v54_v35, %v88_v44 }
  0xa7   :  { %v69_v39 = vpop.xlane.xlu1 %68 }
  0xa8   :  { %v57_v41 = vpop.xlane.xlu0 %56  ;;  %v118_v46 = vrot.slane %v69_v39, %v93_v40 }
  0xa9   :  { %v94_v49 = vrot.slane %v57_v41, %v93_v40 }
  0xaa   :  { %v119_v55 = vsel %vm95_vm2, %v118_v46, %v114_v51 }
  0xab   :  { %v72_v45 = vpop.xlane.xlu1 %71  ;;  %v96_v58 = vsel %vm95_vm2, %v94_v49, %v89_v53 }
  0xac   :  { %v60_v47 = vpop.xlane.xlu0 %59  ;;  %v123_v50 = vrot.slane %v72_v45, %v100_v43 }
  0xad   :  { %v101_v52 = vrot.slane %v60_v47, %v100_v43 }
  0xae   :  { %v124_v59 = vsel %vm102_vm3, %v123_v50, %v119_v55 }
  0xaf   :  { %v75_v54 = vpop.xlane.xlu1 %74  ;;  %v103_v61 = vsel %vm102_vm3, %v101_v52, %v96_v58 }
  0xb0   :  { %v128_v56 = vrot.slane %v75_v54, %v107_v48  ;;  %v63_v57 = vpop.xlane.xlu0 %62 }
  0xb1   :  { %v108_v60 = vrot.slane %v63_v57, %v107_v48 }
  0xb2   :  { %v129_v62 = vsel %vm109_vm4, %v128_v56, %v124_v59 }
  0xb3   :  { %v110_v0 = vsel %vm109_vm4, %v108_v60, %v103_v61 }
  0xb4   :  { %v131_v1 = vsel %vm130_vm5, %v129_v62, %v110_v0 }
  0xb5   :  { %v133_v2 = vadd.f32 %v131_v1, %v51_v63 }
  0xb7   :  { %135 = vst.msk [vmem:[#allocation2] sm:$0x3] %vm33_vm0, %v133_v2 }
  0xbe   :  { %v139_v3 = vld [vmem:[#allocation2] sm:$0x3] }
  0xbf   :  { %v140_v4 = vmul.f32 0.00390625, %v139_v3 }
  0xc1   :  { %337 = vmatmul.mubr.msk.f32.vlgmr.msra.gmra.mrb[0].mxu0 %vm145_vm6, %v140_v4 }
 0x194   :  { %v215_v8 = vpop.f32.mrb[0].mxu0 }
 0x195   :  { %v219_v9 = vmax.f32 %v215_v8, 0.0  ;;  %v338_v10 = vpop.f32.mrb[1].mxu0 }
 0x197   :  { %344 = vmatmul.mubr.msk.f32.vlgmr.msra.gmra.mrb[0].mxu1 %vm222_vm7, %v219_v9 }
 0x26a   :  { %v292_v11 = vpop.f32.mrb[0].mxu1 }
 0x26b   :  { %v296_v12 = vsub.f32 0.0, %v292_v11  ;;  %v345_v13 = vpop.f32.mrb[1].mxu1 }
 0x26d   :  { %v297_v14 = vmul.f32 1.442695, %v296_v12 }
 0x26f   :  { %362 = vpow2.f32 %v297_v14 }
 0x279   :  { %v363_v15 = vpop.eup %362 }
 0x27a   :  { %v299_v16 = vadd.f32 1.0, %v363_v15 }
 0x27c   :  { %364 = vrcp.f32 %v299_v16 }
 0x286   :  { %v365_v17 = vpop.eup %364 }
 0x287   :  { %302 = vst.msk [vmem:[#allocation6] sm:$0x3] %vm33_vm0, %v365_v17 }
 0x288   :  { %399 = shalt.err (!%p396_p12)
}
 0x289   :  { %s400_s13 = scalar_lea.hbm %s489_s3, 32 }
 0x28a   :  { %p401_p13 = scmp.ne.s32.totalorder %s489_s3, %s400_s13  ;;  %p404_p0 = scmp.lt.u32.totalorder %s400_s13, %s489_s3 }
 0x28c   :  { %p406_p1 = pnand %p404_p0, %p401_p13 }
 0x28e   :  { %409 = shalt.err (!%p406_p1)
}
 0x28f   :  { %312 = dma.vmem_to_hbm [thread:$0]  %s310_s10, 32, %s489_s3, [#allocation5]  }
 0x290   :  { %412 = dma.done.wait [#allocation5], 32  }
 0x291   :  { %413 = vsyncadd [#allocation5], 4294967264 }
 0x292   :  { %316 = vsyncpa [#allocation4], 1 }
 0x293   :  { %317 = vsyncpa [#allocation5], 1 }

</bundles_post_ra>
